<compile_context>
chip_gen: v6e
topology: v6e:2x2x1
jax: 0.10.0
libtpu: 0.0.40
codegen_flags: <defaults>
</compile_context>

<pallas_src>
import jax
import jax.numpy as jnp
from jax.experimental import pallas as pl
from jax.experimental.pallas import tpu as pltpu


def rnn_kernel(x_ref, wih_ref, whh_ref, b_ref, wout_ref, bout_ref,
               out_ref, xp_ref):
    """Single-invocation vanilla RNN forward.

    x_ref:    (T*B, I) bf16  time-major, flattened input sequence
    wih_ref:  (I, H)   bf16  input->hidden weight, pre-transposed
    whh_ref:  (H, H)   bf16  hidden->hidden weight, pre-transposed
    b_ref:    (1, H)   f32   pre-summed RNN bias (b_ih + b_hh)
    wout_ref: (H, 128) bf16  output head weight, pre-transposed, lane-padded
    bout_ref: (1, 128) f32   output head bias, lane-padded
    out_ref:  (B, 128) f32   final logits (lane-padded; wrapper slices [:, :O])
    xp_ref:   (T*B, H) f32   VMEM scratch for the hoisted input projection
    """
    TB, _ = x_ref.shape
    H = whh_ref.shape[0]
    B = out_ref.shape[0]
    T = TB // B

    # ---- prologue: hoist the input projection out of the recurrence ------
    # One (T*B, I) x (I, H) bf16 MXU matmul, f32 accumulate, pre-summed bias
    # folded in.  Result lives in VMEM scratch (bounded vreg pressure).
    xp_ref[...] = (jnp.dot(x_ref[...], wih_ref[...],
                           preferred_element_type=jnp.float32)
                   + b_ref[...])                           # (T*B, H) f32

    whh = whh_ref[...]                                      # (H, H) bf16

    # ---- recurrence: only h @ W_hh^T serializes ---------------------------
    # T is a static Python int -> fully unrolled with static row-range reads
    # from the time-major scratch (contiguous full-tile sublane loads).
    h = jnp.zeros((B, H), dtype=jnp.float32)
    for t in range(T):
        xp_t = xp_ref[t * B:(t + 1) * B, :]                 # (B, H) f32
        hw = jnp.dot(h.astype(whh.dtype), whh,
                     preferred_element_type=jnp.float32)    # bf16 x bf16 -> f32
        h = jnp.tanh(xp_t + hw)                             # f32 elementwise

    # ---- linear head (lane-dense, 128-wide) --------------------------------
    logits = (jnp.dot(h.astype(wout_ref.dtype), wout_ref[...],
                      preferred_element_type=jnp.float32)
              + bout_ref[...])                               # (B, 128) f32
    out_ref[...] = logits.astype(out_ref.dtype)


def vanilla_rnn_forward(images, params):
    """images: (batch, seq, input_size) f32 -> logits (batch, output_size)."""
    w_ih, w_hh, b_ih, b_hh, w_out, b_out = params
    B, T, I = images.shape
    H = w_hh.shape[0]
    O = w_out.shape[0]
    O_PAD = 128  # lane-dense output width

    # Glue (cheap one-time XLA ops, outside the serial path):
    #   * time-major + flatten the input,
    #   * pre-transpose weights for plain (M,K)x(K,N) MXU matmuls,
    #   * pre-sum the two RNN bias vectors,
    #   * zero-pad the head to 128 lanes,
    #   * cast MXU operands to bf16 (f32 accumulate inside the kernel).
    x_tm = jnp.transpose(images, (1, 0, 2)).reshape(T * B, I)      # (T*B, I)
    x_tm = x_tm.astype(jnp.bfloat16)
    wih_t = w_ih.T.astype(jnp.bfloat16)                            # (I, H)
    whh_t = w_hh.T.astype(jnp.bfloat16)                            # (H, H)
    b = (b_ih + b_hh).reshape(1, H).astype(jnp.float32)            # (1, H)
    wout_p = jnp.zeros((H, O_PAD), jnp.float32).at[:, :O].set(w_out.T)
    wout_p = wout_p.astype(jnp.bfloat16)                           # (H, 128)
    bout_p = jnp.zeros((1, O_PAD), jnp.float32).at[:, :O].set(b_out)

    # Entire working set (~15 KiB) fits in VMEM on every TPU generation ->
    # single grid-less invocation, every operand a whole-array VMEM block.
    out_padded = pl.pallas_call(
        rnn_kernel,
        out_shape=jax.ShapeDtypeStruct((B, O_PAD), jnp.float32),
        in_specs=[pl.BlockSpec(memory_space=pltpu.MemorySpace.VMEM)
                  for _ in range(6)],
        out_specs=pl.BlockSpec(memory_space=pltpu.MemorySpace.VMEM),
        scratch_shapes=[pltpu.VMEM((T * B, H), jnp.float32)],
    )(x_tm, wih_t, whh_t, b, wout_p, bout_p)

    return out_padded[:, :O]


def init_params(key, input_size, hidden_size, output_size):
    """Deterministic init mimicking PyTorch's U(-1/sqrt(H), 1/sqrt(H))."""
    ks = jax.random.split(key, 6)
    s = 1.0 / jnp.sqrt(hidden_size)
    w_ih = jax.random.uniform(ks[0], (hidden_size, input_size),
                              minval=-s, maxval=s, dtype=jnp.float32)
    w_hh = jax.random.uniform(ks[1], (hidden_size, hidden_size),
                              minval=-s, maxval=s, dtype=jnp.float32)
    b_ih = jax.random.uniform(ks[2], (hidden_size,),
                              minval=-s, maxval=s, dtype=jnp.float32)
    b_hh = jax.random.uniform(ks[3], (hidden_size,),
                              minval=-s, maxval=s, dtype=jnp.float32)
    w_out = jax.random.uniform(ks[4], (output_size, hidden_size),
                               minval=-s, maxval=s, dtype=jnp.float32)
    b_out = jax.random.uniform(ks[5], (output_size,),
                               minval=-s, maxval=s, dtype=jnp.float32)
    return w_ih, w_hh, b_ih, b_hh, w_out, b_out


def reference_forward(images, params):
    """Pure-JAX f32 reference of the PyTorch forward for a correctness check."""
    w_ih, w_hh, b_ih, b_hh, w_out, b_out = params
    x = jnp.transpose(images, (1, 0, 2))           # (T, B, I)
    B = images.shape[0]
    H = w_hh.shape[0]
    h = jnp.zeros((B, H), jnp.float32)
    for t in range(x.shape[0]):
        h = jnp.tanh(x[t] @ w_ih.T + b_ih + h @ w_hh.T + b_hh)
    return h @ w_out.T + b_out                     # (B, O)


if __name__ == "__main__":
    batch_size, seq_len, input_size = 8, 8, 16
    hidden_size, output_size = 32, 10

    key = jax.random.PRNGKey(0)
    k_img, k_par = jax.random.split(key)
    images = jax.random.normal(
        k_img, (batch_size, seq_len, input_size), dtype=jnp.float32)
    params = init_params(k_par, input_size, hidden_size, output_size)

    out = vanilla_rnn_forward(images, params)
    out = jax.block_until_ready(out)

    ref = reference_forward(images, params)
    assert out.shape == (batch_size, output_size)
    # bf16 MXU operands -> loosened tolerance vs. the f32 reference.
    assert jnp.allclose(out, ref, atol=5e-2, rtol=5e-2), (
        jnp.max(jnp.abs(out - ref)))

    print("KERNEL_OK")
</pallas_src>

<mosaic_0001>
module attributes {stable_mosaic.version = 11 : i64} {
  func.func @rnn_kernel(%arg0: memref<64x16xbf16, #tpu.memory_space<vmem>>, %arg1: memref<16x32xbf16, #tpu.memory_space<vmem>>, %arg2: memref<32x32xbf16, #tpu.memory_space<vmem>>, %arg3: memref<1x32xf32, #tpu.memory_space<vmem>>, %arg4: memref<32x128xbf16, #tpu.memory_space<vmem>>, %arg5: memref<1x128xf32, #tpu.memory_space<vmem>>, %arg6: memref<8x128xf32, #tpu.memory_space<vmem>>, %arg7: memref<64x32xf32, #tpu.memory_space<vmem>>) attributes {dimension_semantics = [], scalar_prefetch = 0 : i64, scratch_operands = 1 : i64, tpu.core_type = #tpu.core_type<tc>} {
    %c0 = arith.constant 0 : index
    %c0_0 = arith.constant 0 : index
    %0 = vector.load %arg0[%c0, %c0_0] : memref<64x16xbf16, #tpu.memory_space<vmem>>, vector<64x16xbf16>
    %c0_1 = arith.constant 0 : index
    %c0_2 = arith.constant 0 : index
    %1 = vector.load %arg1[%c0_1, %c0_2] : memref<16x32xbf16, #tpu.memory_space<vmem>>, vector<16x32xbf16>
    %cst = arith.constant dense<0.000000e+00> : vector<64x32xf32>
    %2 = tpu.matmul %0, %1, %cst {dimension_numbers = #tpu.dot_dimension_numbers<[1], [0], [0], [1], [0, 0, 1, 1], [], []>} : vector<64x16xbf16>, vector<16x32xbf16>, vector<64x32xf32> -> vector<64x32xf32>
    %c0_3 = arith.constant 0 : index
    %c0_4 = arith.constant 0 : index
    %3 = vector.load %arg3[%c0_3, %c0_4] : memref<1x32xf32, #tpu.memory_space<vmem>>, vector<1x32xf32>
    %4 = vector.broadcast %3 : vector<1x32xf32> to vector<64x32xf32>
    %5 = arith.addf %2, %4 : vector<64x32xf32>
    %c0_5 = arith.constant 0 : index
    %c0_6 = arith.constant 0 : index
    %6 = vector.load %arg7[%c0_5, %c0_6] : memref<64x32xf32, #tpu.memory_space<vmem>>, vector<64x32xf32>
    tpu.vector_store %arg7[%c0_5, %c0_6], %5 {strides = array<i32>} : memref<64x32xf32, #tpu.memory_space<vmem>>, vector<64x32xf32>,
    %c0_7 = arith.constant 0 : index
    %c0_8 = arith.constant 0 : index
    %7 = vector.load %arg2[%c0_7, %c0_8] : memref<32x32xbf16, #tpu.memory_space<vmem>>, vector<32x32xbf16>
    %cst_9 = arith.constant 0.000000e+00 : f32
    %8 = vector.broadcast %cst_9 : f32 to vector<8x32xf32>
    %c0_10 = arith.constant 0 : index
    %c0_11 = arith.constant 0 : index
    %9 = vector.load %arg7[%c0_10, %c0_11] : memref<64x32xf32, #tpu.memory_space<vmem>>, vector<8x32xf32>
    %10 = arith.truncf %8 : vector<8x32xf32> to vector<8x32xbf16>
    %cst_12 = arith.constant dense<0.000000e+00> : vector<8x32xf32>
    %11 = tpu.matmul %10, %7, %cst_12 {dimension_numbers = #tpu.dot_dimension_numbers<[1], [0], [0], [1], [0, 0, 1, 1], [], []>} : vector<8x32xbf16>, vector<32x32xbf16>, vector<8x32xf32> -> vector<8x32xf32>
    %12 = arith.addf %9, %11 : vector<8x32xf32>
    %13 = math.tanh %12 : vector<8x32xf32>
    %c8 = arith.constant 8 : index
    %c0_13 = arith.constant 0 : index
    %14 = vector.load %arg7[%c8, %c0_13] : memref<64x32xf32, #tpu.memory_space<vmem>>, vector<8x32xf32>
    %15 = arith.truncf %13 : vector<8x32xf32> to vector<8x32xbf16>
    %cst_14 = arith.constant dense<0.000000e+00> : vector<8x32xf32>
    %16 = tpu.matmul %15, %7, %cst_14 {dimension_numbers = #tpu.dot_dimension_numbers<[1], [0], [0], [1], [0, 0, 1, 1], [], []>} : vector<8x32xbf16>, vector<32x32xbf16>, vector<8x32xf32> -> vector<8x32xf32>
    %17 = arith.addf %14, %16 : vector<8x32xf32>
    %18 = math.tanh %17 : vector<8x32xf32>
    %c16 = arith.constant 16 : index
    %c0_15 = arith.constant 0 : index
    %19 = vector.load %arg7[%c16, %c0_15] : memref<64x32xf32, #tpu.memory_space<vmem>>, vector<8x32xf32>
    %20 = arith.truncf %18 : vector<8x32xf32> to vector<8x32xbf16>
    %cst_16 = arith.constant dense<0.000000e+00> : vector<8x32xf32>
    %21 = tpu.matmul %20, %7, %cst_16 {dimension_numbers = #tpu.dot_dimension_numbers<[1], [0], [0], [1], [0, 0, 1, 1], [], []>} : vector<8x32xbf16>, vector<32x32xbf16>, vector<8x32xf32> -> vector<8x32xf32>
    %22 = arith.addf %19, %21 : vector<8x32xf32>
    %23 = math.tanh %22 : vector<8x32xf32>
    %c24 = arith.constant 24 : index
    %c0_17 = arith.constant 0 : index
    %24 = vector.load %arg7[%c24, %c0_17] : memref<64x32xf32, #tpu.memory_space<vmem>>, vector<8x32xf32>
    %25 = arith.truncf %23 : vector<8x32xf32> to vector<8x32xbf16>
    %cst_18 = arith.constant dense<0.000000e+00> : vector<8x32xf32>
    %26 = tpu.matmul %25, %7, %cst_18 {dimension_numbers = #tpu.dot_dimension_numbers<[1], [0], [0], [1], [0, 0, 1, 1], [], []>} : vector<8x32xbf16>, vector<32x32xbf16>, vector<8x32xf32> -> vector<8x32xf32>
    %27 = arith.addf %24, %26 : vector<8x32xf32>
    %28 = math.tanh %27 : vector<8x32xf32>
    %c32 = arith.constant 32 : index
    %c0_19 = arith.constant 0 : index
    %29 = vector.load %arg7[%c32, %c0_19] : memref<64x32xf32, #tpu.memory_space<vmem>>, vector<8x32xf32>
    %30 = arith.truncf %28 : vector<8x32xf32> to vector<8x32xbf16>
    %cst_20 = arith.constant dense<0.000000e+00> : vector<8x32xf32>
    %31 = tpu.matmul %30, %7, %cst_20 {dimension_numbers = #tpu.dot_dimension_numbers<[1], [0], [0], [1], [0, 0, 1, 1], [], []>} : vector<8x32xbf16>, vector<32x32xbf16>, vector<8x32xf32> -> vector<8x32xf32>
    %32 = arith.addf %29, %31 : vector<8x32xf32>
    %33 = math.tanh %32 : vector<8x32xf32>
    %c40 = arith.constant 40 : index
    %c0_21 = arith.constant 0 : index
    %34 = vector.load %arg7[%c40, %c0_21] : memref<64x32xf32, #tpu.memory_space<vmem>>, vector<8x32xf32>
    %35 = arith.truncf %33 : vector<8x32xf32> to vector<8x32xbf16>
    %cst_22 = arith.constant dense<0.000000e+00> : vector<8x32xf32>
    %36 = tpu.matmul %35, %7, %cst_22 {dimension_numbers = #tpu.dot_dimension_numbers<[1], [0], [0], [1], [0, 0, 1, 1], [], []>} : vector<8x32xbf16>, vector<32x32xbf16>, vector<8x32xf32> -> vector<8x32xf32>
    %37 = arith.addf %34, %36 : vector<8x32xf32>
    %38 = math.tanh %37 : vector<8x32xf32>
    %c48 = arith.constant 48 : index
    %c0_23 = arith.constant 0 : index
    %39 = vector.load %arg7[%c48, %c0_23] : memref<64x32xf32, #tpu.memory_space<vmem>>, vector<8x32xf32>
    %40 = arith.truncf %38 : vector<8x32xf32> to vector<8x32xbf16>
    %cst_24 = arith.constant dense<0.000000e+00> : vector<8x32xf32>
    %41 = tpu.matmul %40, %7, %cst_24 {dimension_numbers = #tpu.dot_dimension_numbers<[1], [0], [0], [1], [0, 0, 1, 1], [], []>} : vector<8x32xbf16>, vector<32x32xbf16>, vector<8x32xf32> -> vector<8x32xf32>
    %42 = arith.addf %39, %41 : vector<8x32xf32>
    %43 = math.tanh %42 : vector<8x32xf32>
    %c56 = arith.constant 56 : index
    %c0_25 = arith.constant 0 : index
    %44 = vector.load %arg7[%c56, %c0_25] : memref<64x32xf32, #tpu.memory_space<vmem>>, vector<8x32xf32>
    %45 = arith.truncf %43 : vector<8x32xf32> to vector<8x32xbf16>
    %cst_26 = arith.constant dense<0.000000e+00> : vector<8x32xf32>
    %46 = tpu.matmul %45, %7, %cst_26 {dimension_numbers = #tpu.dot_dimension_numbers<[1], [0], [0], [1], [0, 0, 1, 1], [], []>} : vector<8x32xbf16>, vector<32x32xbf16>, vector<8x32xf32> -> vector<8x32xf32>
    %47 = arith.addf %44, %46 : vector<8x32xf32>
    %48 = math.tanh %47 : vector<8x32xf32>
    %49 = arith.truncf %48 : vector<8x32xf32> to vector<8x32xbf16>
    %c0_27 = arith.constant 0 : index
    %c0_28 = arith.constant 0 : index
    %50 = vector.load %arg4[%c0_27, %c0_28] : memref<32x128xbf16, #tpu.memory_space<vmem>>, vector<32x128xbf16>
    %cst_29 = arith.constant dense<0.000000e+00> : vector<8x128xf32>
    %51 = tpu.matmul %49, %50, %cst_29 {dimension_numbers = #tpu.dot_dimension_numbers<[1], [0], [0], [1], [0, 0, 1, 1], [], []>} : vector<8x32xbf16>, vector<32x128xbf16>, vector<8x128xf32> -> vector<8x128xf32>
    %c0_30 = arith.constant 0 : index
    %c0_31 = arith.constant 0 : index
    %52 = vector.load %arg5[%c0_30, %c0_31] : memref<1x128xf32, #tpu.memory_space<vmem>>, vector<1x128xf32>
    %53 = vector.broadcast %52 : vector<1x128xf32> to vector<8x128xf32>
    %54 = arith.addf %51, %53 : vector<8x128xf32>
    %c0_32 = arith.constant 0 : index
    %c0_33 = arith.constant 0 : index
    %55 = vector.load %arg6[%c0_32, %c0_33] : memref<8x128xf32, #tpu.memory_space<vmem>>, vector<8x128xf32>
    tpu.vector_store %arg6[%c0_32, %c0_33], %54 {strides = array<i32>} : memref<8x128xf32, #tpu.memory_space<vmem>>, vector<8x128xf32>,
    return
  }
}

</mosaic_0001>

<bundles_post_ra>
// kernel: tpu_custom_call.1
= control target key start
LH: loop header
LB: loop body
LE: loop exit
PB: predicated region body
PF: predicated region fallthrough
CT: control target
= control target key end

     0   :  { %v816_v1 = vmov 0.0   ;;  %vm68_vm0 = vcmask 130048   ;;  %vm817_vm1 = vmmov 0   ;;  %s967_s0 = inlined_call_operand.vmem [shape: bf16[64,16], index: 0, kind: input, shape index: {}]   ;;  %s968_s1 = inlined_call_operand.vmem [shape: bf16[16,32], index: 1, kind: input, shape index: {}]   ;;  %s969_s2 = inlined_call_operand.vmem [shape: bf16[32,32], index: 2, kind: input, shape index: {}]   ;;  %s970_s3 = inlined_call_operand.vmem [shape: f32[1,32], index: 3, kind: input, shape index: {}]   ;;  %s971_s4 = inlined_call_operand.vmem [shape: bf16[32,128], index: 4, kind: input, shape index: {}]   ;;  %s972_s5 = inlined_call_operand.vmem [shape: f32[1,128], index: 5, kind: input, shape index: {}]   ;;  %s973_s6 = inlined_call_operand.hbm [shape: f32[8,128], index: 6, kind: output, shape index: {}]  }
   0x1   :  { %v769_v0 = vld [vmem:[%s968_s1] sm:$0xff]   ;;  %693 = vmatprep.subr.bf16.mxu1 %v816_v1  ;;  %v865_v3 = vld [vmem:[%s969_s2 + $0x8] sm:$0xff]   ;;  %697 = vmatprep.mubr.msk.bf16.mxu1 %vm817_vm1, %v816_v1 }
   0x2   :  { %v770_v2 = vld [vmem:[%s967_s0] sm:$0xff]   ;;  %683 = vmatprep.subr.bf16.mxu0 %v769_v0  ;;  %v772_v4 = vld [vmem:[%s967_s0 + $0x8] sm:$0xff]   ;;  %694 = vmatpush3.bf16.msra.mxu1 %v865_v3 }
   0x3   :  { %684 = vmatpush3.bf16.msra.mxu0 %v769_v0  ;;  %685 = vmatprep.mubr.msk.bf16.mxu0 %vm68_vm0, %v770_v2  ;;  %v875_v5 = vld [vmem:[%s969_s2] sm:$0xff]  }
   0x4   :  { %695 = vmatprep.subr.bf16.mxu1 %v816_v1  ;;  %709 = vmatprep.subr.bf16.mxu0 %v816_v1 }
   0x6   :  { %686 = vmatmul.mubr.msk.bf16.vlgmr.msra.gmra.mxu0 %vm68_vm0, %v772_v4 }
   0x7   :  { %710 = vmatpush3.bf16.msra.mxu0 %v865_v3 }
   0x8   :  { %11 = vsyncpa [#allocation4], 0  ;;  %696 = vmatpush3.bf16.msra.mxu1 %v875_v5  ;;  %711 = vmatprep.subr.bf16.mxu0 %v816_v1  ;;  %v818_v6 = vmov 0   ;;  %v628_v7 = vld [vmem:[%s970_s3] ss:$0 sm:$0xff]  ;;  %vm146_vm2 = vcmask 261120  }
   0x9   :  { %701 = vmatprep.subr.bf16.mxu1 %v816_v1  ;;  %v774_v24 = vld [vmem:[%s967_s0 + $0x10] sm:$0xff]   ;;  %v775_v25 = vld [vmem:[%s967_s0 + $0x18] sm:$0xff]   ;;  %s819_s15 = smov [#allocation3]  }
   0xa   :  { %689 = vmatprep.mubr.msk.bf16.mxu0 %vm68_vm0, %v774_v24  ;;  %s620_s16 = sshll.u32 %s819_s15, 4  ;;  %s621_s16 = int_to_ptr.vmem [resolvable:$true] %s620_s16 }
   0xb   :  { %698 = vmatmul.mubr.bf16.vlgmr.msra.gmra.mxu1 %v818_v6  ;;  %712 = vmatpush3.bf16.msra.mxu0 %v875_v5  ;;  %p799_p1 = scmp.lt.s32.totalorder %s621_s16, %s621_s16 }
   0xc   :  { %702 = vmatpush3.bf16.msra.mxu1 %v865_v3  ;;  %705 = vmatprep.mubr.msk.bf16.mxu1 %vm817_vm1, %v816_v1 }
   0xd   :  { %703 = vmatprep.subr.bf16.mxu1 %v816_v1  ;;  %725 = vmatprep.subr.bf16.mxu0 %v816_v1 }
   0xe   :  { %690 = vmatmul.mubr.msk.bf16.gmra.mxu0 %vm68_vm0, %v775_v25 }
   0xf   :  { %713 = vmatprep.mubr.msk.bf16.mxu0 %vm817_vm1, %v816_v1 }
  0x10   :  { %704 = vmatpush3.bf16.msra.mxu1 %v875_v5 }
  0x11   :  { %717 = vmatprep.subr.bf16.mxu1 %v816_v1 }
  0xc6   :  { %v687_v8 = vpop.f32.mrf.mxu0 }
  0xc7   :  { %v124_v9 = vadd.f32 %v687_v8, %v628_v7 }
  0xc8   :  { %v115_v10 = vpop.f32.mrf.mxu0 }
  0xc9   :  { %149 = vst.msk [vmem:[#allocation2 + $0x10] sm:$0xff] %vm146_vm2, %v124_v9  ;;  %v116_v11 = vadd.f32 %v628_v7, %v115_v10 }
  0xca   :  { %v688_v12 = vpop.f32.mrf.mxu0 }
  0xcb   :  { %147 = vst.msk [vmem:[#allocation2] sm:$0xff] %vm146_vm2, %v116_v11  ;;  %v127_v13 = vadd.f32 %v688_v12, %v628_v7  ;;  %v209_v14 = vpop.f32.mrf.mxu1 }
  0xcc   :  { %v118_v15 = vpop.f32.mrf.mxu0 }
  0xcd   :  { %150 = vst.msk [vmem:[#allocation2 + $0x18] sm:$0xff] %vm146_vm2, %v127_v13  ;;  %v119_v16 = vadd.f32 %v628_v7, %v118_v15  ;;  %v699_v17 = vpop.f32.mrf.mxu1 }
  0xce   :  { %v691_v34 = vpop.f32.mrf.mxu0 }
  0xcf   :  { %148 = vst.msk [vmem:[#allocation2 + $0x8] sm:$0xff] %vm146_vm2, %v119_v16  ;;  %v212_v18 = vpop.f32.mrf.mxu1  ;;  %v140_v35 = vadd.f32 %v691_v34, %v628_v7 }
  0xd0   :  { %v131_v36 = vpop.f32.mrf.mxu0  ;;  %v264_v42 = vld [vmem:[#allocation2 + $0x10] sm:$0xff] }
  0xd1   :  { %v700_v19 = vpop.f32.mrf.mxu1  ;;  %153 = vst.msk [vmem:[#allocation2 + $0x30] sm:$0xff] %vm146_vm2, %v140_v35  ;;  %v132_v37 = vadd.f32 %v628_v7, %v131_v36 }
  0xd2   :  { %v159_v20 = vld [vmem:[#allocation2] sm:$0xff]  ;;  %v692_v38 = vpop.f32.mrf.mxu0  ;;  %v776_v19 = vld [vmem:[%s971_s4 + $0x8] sm:$0xff]  }
  0xd3   :  { %v215_v21 = vadd.f32 %v209_v14, %v159_v20  ;;  %151 = vst.msk [vmem:[#allocation2 + $0x20] sm:$0xff] %vm146_vm2, %v132_v37  ;;  %v143_v39 = vadd.f32 %v692_v38, %v628_v7  ;;  %v777_v20 = vld [vmem:[%s971_s4] sm:$0xff]   ;;  %s794_s4 = scalar_lea.vmem %s621_s16, 128 }
  0xd4   :  { %v134_v40 = vpop.f32.mrf.mxu0  ;;  %v311_v50 = vld [vmem:[#allocation2 + $0x18] sm:$0xff]  ;;  %p795_p0 = scmp.ne.s32.totalorder %s621_s16, %s794_s4  ;;  %p800_p2 = scmp.lt.s32.totalorder %s794_s4, %s794_s4 }
  0xd5   :  { %778 = vtanh.f32 %v215_v21  ;;  %154 = vst.msk [vmem:[#allocation2 + $0x38] sm:$0xff] %vm146_vm2, %v143_v39  ;;  %v135_v41 = vadd.f32 %v628_v7, %v134_v40 }
  0xd6   :  { %v217_v26 = vld [vmem:[#allocation2 + $0x8] sm:$0xff]  ;;  %p801_p3 = por %p800_p2, %p799_p1 }
  0xd7   :  { %152 = vst.msk [vmem:[#allocation2 + $0x28] sm:$0xff] %vm146_vm2, %v135_v41 }
  0xd8   :  { %p802_p4 = pnand %p801_p3, %p795_p0 }
  0xda   :  { %v358_v58 = vld [vmem:[#allocation2 + $0x20] sm:$0xff] }
  0xdc   :  { %v499_v21 = vld [vmem:[#allocation2 + $0x38] sm:$0xff] }
  0xde   :  { %v405_v4 = vld [vmem:[#allocation2 + $0x28] sm:$0xff] }
  0xe2   :  { %v779_v22 = vpop.eup %778 }
  0xe3   :  { %v218_v23 = vpack.c.bf16 %v779_v22, %v779_v22 }
  0xe5   :  { %706 = vmatmul.mubr.msk.bf16.vlgmr.msra.gmra.mxu1 %vm146_vm2, %v218_v23 }
  0xe6   :  { %718 = vmatpush3.bf16.msra.mxu1 %v865_v3  ;;  %721 = vmatprep.mubr.msk.bf16.mxu1 %vm817_vm1, %v816_v1 }
  0xe7   :  { %719 = vmatprep.subr.bf16.mxu1 %v816_v1 }
  0xea   :  { %720 = vmatpush3.bf16.msra.mxu1 %v875_v5 }
  0xeb   :  { %733 = vmatprep.subr.bf16.mxu1 %v816_v1 }
 0x1a5   :  { %v256_v27 = vpop.f32.mrf.mxu1 }
 0x1a6   :  { %v262_v28 = vadd.f32 %v256_v27, %v217_v26 }
 0x1a7   :  { %v707_v29 = vpop.f32.mrf.mxu1 }
 0x1a8   :  { %780 = vtanh.f32 %v262_v28 }
 0x1a9   :  { %v259_v30 = vpop.f32.mrf.mxu1 }
 0x1ab   :  { %v708_v31 = vpop.f32.mrf.mxu1 }
 0x1b5   :  { %v781_v32 = vpop.eup %780 }
 0x1b6   :  { %v265_v33 = vpack.c.bf16 %v781_v32, %v781_v32 }
 0x1b8   :  { %714 = vmatmul.mubr.msk.bf16.vlgmr.msra.gmra.mxu0 %vm146_vm2, %v265_v33 }
 0x1b9   :  { %726 = vmatpush3.bf16.msra.mxu0 %v865_v3  ;;  %729 = vmatprep.mubr.msk.bf16.mxu0 %vm817_vm1, %v816_v1 }
 0x1ba   :  { %727 = vmatprep.subr.bf16.mxu0 %v816_v1 }
 0x1bd   :  { %728 = vmatpush3.bf16.msra.mxu0 %v875_v5 }
 0x1be   :  { %741 = vmatprep.subr.bf16.mxu0 %v816_v1 }
 0x278   :  { %v303_v43 = vpop.f32.mrf.mxu0 }
 0x279   :  { %v309_v44 = vadd.f32 %v303_v43, %v264_v42 }
 0x27a   :  { %v715_v45 = vpop.f32.mrf.mxu0 }
 0x27b   :  { %782 = vtanh.f32 %v309_v44 }
 0x27c   :  { %v306_v46 = vpop.f32.mrf.mxu0 }
 0x27e   :  { %v716_v47 = vpop.f32.mrf.mxu0 }
 0x288   :  { %v783_v48 = vpop.eup %782 }
 0x289   :  { %v312_v49 = vpack.c.bf16 %v783_v48, %v783_v48 }
 0x28b   :  { %722 = vmatmul.mubr.msk.bf16.vlgmr.msra.gmra.mxu1 %vm146_vm2, %v312_v49 }
 0x28c   :  { %734 = vmatpush3.bf16.msra.mxu1 %v865_v3  ;;  %737 = vmatprep.mubr.msk.bf16.mxu1 %vm817_vm1, %v816_v1 }
 0x28d   :  { %735 = vmatprep.subr.bf16.mxu1 %v816_v1 }
 0x290   :  { %736 = vmatpush3.bf16.msra.mxu1 %v875_v5 }
 0x291   :  { %749 = vmatprep.subr.bf16.mxu1 %v816_v1 }
 0x34b   :  { %v350_v51 = vpop.f32.mrf.mxu1 }
 0x34c   :  { %v356_v52 = vadd.f32 %v350_v51, %v311_v50 }
 0x34d   :  { %v723_v53 = vpop.f32.mrf.mxu1 }
 0x34e   :  { %784 = vtanh.f32 %v356_v52 }
 0x34f   :  { %v353_v54 = vpop.f32.mrf.mxu1 }
 0x351   :  { %v724_v55 = vpop.f32.mrf.mxu1 }
 0x35b   :  { %v785_v56 = vpop.eup %784 }
 0x35c   :  { %v359_v57 = vpack.c.bf16 %v785_v56, %v785_v56 }
 0x35e   :  { %730 = vmatmul.mubr.msk.bf16.vlgmr.msra.gmra.mxu0 %vm146_vm2, %v359_v57 }
 0x35f   :  { %742 = vmatpush3.bf16.msra.mxu0 %v865_v3  ;;  %745 = vmatprep.mubr.msk.bf16.mxu0 %vm817_vm1, %v816_v1 }
 0x360   :  { %743 = vmatprep.subr.bf16.mxu0 %v816_v1 }
 0x363   :  { %744 = vmatpush3.bf16.msra.mxu0 %v875_v5 }
 0x364   :  { %757 = vmatprep.subr.bf16.mxu0 %v816_v1 }
 0x41e   :  { %v397_v59 = vpop.f32.mrf.mxu0 }
 0x41f   :  { %v403_v60 = vadd.f32 %v397_v59, %v358_v58 }
 0x420   :  { %v731_v61 = vpop.f32.mrf.mxu0 }
 0x421   :  { %786 = vtanh.f32 %v403_v60 }
 0x422   :  { %v400_v62 = vpop.f32.mrf.mxu0 }
 0x424   :  { %v732_v63 = vpop.f32.mrf.mxu0 }
 0x42e   :  { %v787_v0 = vpop.eup %786 }
 0x42f   :  { %v406_v2 = vpack.c.bf16 %v787_v0, %v787_v0 }
 0x431   :  { %738 = vmatmul.mubr.msk.bf16.vlgmr.msra.gmra.mxu1 %vm146_vm2, %v406_v2 }
 0x432   :  { %750 = vmatpush3.bf16.msra.mxu1 %v865_v3  ;;  %753 = vmatprep.mubr.msk.bf16.mxu1 %vm817_vm1, %v816_v1  ;;  %v452_v3 = vld [vmem:[#allocation2 + $0x30] sm:$0xff] }
 0x433   :  { %751 = vmatprep.subr.bf16.mxu1 %v816_v1 }
 0x436   :  { %752 = vmatpush3.bf16.msra.mxu1 %v875_v5 }
 0x4f1   :  { %v444_v6 = vpop.f32.mrf.mxu1 }
 0x4f2   :  { %v450_v7 = vadd.f32 %v444_v6, %v405_v4 }
 0x4f3   :  { %v739_v8 = vpop.f32.mrf.mxu1 }
 0x4f4   :  { %788 = vtanh.f32 %v450_v7 }
 0x4f5   :  { %v447_v9 = vpop.f32.mrf.mxu1 }
 0x4f7   :  { %v740_v10 = vpop.f32.mrf.mxu1 }
 0x501   :  { %v789_v11 = vpop.eup %788 }
 0x502   :  { %v453_v12 = vpack.c.bf16 %v789_v11, %v789_v11 }
 0x504   :  { %746 = vmatmul.mubr.msk.bf16.vlgmr.msra.gmra.mxu0 %vm146_vm2, %v453_v12 }
 0x505   :  { %761 = vmatprep.mubr.msk.bf16.mxu0 %vm817_vm1, %v816_v1  ;;  %758 = vmatpush3.bf16.msra.mxu0 %v776_v19 }
 0x506   :  { %759 = vmatprep.subr.bf16.mxu0 %v816_v1  ;;  %v647_v1 = vld [vmem:[%s972_s5] ss:$0 sm:$0xff] }
 0x509   :  { %760 = vmatpush3.bf16.msra.mxu0 %v777_v20 }
 0x5c4   :  { %v491_v13 = vpop.f32.mrf.mxu0 }
 0x5c5   :  { %v497_v14 = vadd.f32 %v491_v13, %v452_v3 }
 0x5c6   :  { %v747_v15 = vpop.f32.mrf.mxu0 }
 0x5c7   :  { %790 = vtanh.f32 %v497_v14 }
 0x5c8   :  { %v494_v5 = vpop.f32.mrf.mxu0 }
 0x5ca   :  { %v748_v16 = vpop.f32.mrf.mxu0 }
 0x5d4   :  { %v791_v17 = vpop.eup %790 }
 0x5d5   :  { %v500_v18 = vpack.c.bf16 %v791_v17, %v791_v17 }
 0x5d7   :  { %754 = vmatmul.mubr.msk.bf16.vlgmr.msra.gmra.mxu1 %vm146_vm2, %v500_v18 }
 0x697   :  { %v538_v22 = vpop.f32.mrf.mxu1 }
 0x698   :  { %v544_v23 = vadd.f32 %v538_v22, %v499_v21 }
 0x699   :  { %v755_v24 = vpop.f32.mrf.mxu1 }
 0x69a   :  { %792 = vtanh.f32 %v544_v23 }
 0x69b   :  { %v541_v25 = vpop.f32.mrf.mxu1 }
 0x69d   :  { %v756_v26 = vpop.f32.mrf.mxu1 }
 0x6a7   :  { %v793_v27 = vpop.eup %792 }
 0x6a8   :  { %v546_v28 = vpack.c.bf16 %v793_v27, %v793_v27 }
 0x6aa   :  { %762 = vmatmul.mubr.msk.bf16.vlgmr.msra.gmra.mxu0 %vm146_vm2, %v546_v28 }
 0x76a   :  { %v607_v29 = vpop.f32.mrf.mxu0 }
 0x76b   :  { %v608_v30 = vadd.f32 %v647_v1, %v607_v29 }
 0x76c   :  { %v763_v31 = vpop.f32.mrf.mxu0 }
 0x76d   :  { %613 = vst [vmem:[#allocation3] sm:$0xff] %v608_v30 }
 0x76e   :  { %v610_v32 = vpop.f32.mrf.mxu0 }
 0x76f   :  { %805 = shalt.err (!%p802_p4)
}
 0x770   :  { %623 = dma.vmem_to_hbm [thread:$0]  %s621_s16, 128, %s973_s6, [#allocation4]   ;;  %v764_v33 = vpop.f32.mrf.mxu0 }
 0x771   :  { %814 = dma.done.wait [#allocation4], 128  }
 0x772   :  { %815 = vsyncadd [#allocation4], 4294967168 }
 0x773   :  { %627 = vsyncpa [#allocation4], 1 }

</bundles_post_ra>
